<compile_context>
chip_gen: v7x
topology: tpu7x:2x2x1
jax: 0.10.0
libtpu: 0.0.40
codegen_flags: <defaults>
</compile_context>

<pallas_src>
import jax
import jax.numpy as jnp
from jax.experimental import pallas as pl
from jax.experimental.pallas import tpu as pltpu

_MEAN = (-0.03, -0.088, -0.188)
_STD = (0.458, 0.448, 0.45)


# ---------------------------------------------------------------------------
# Pallas kernel body
# ---------------------------------------------------------------------------
def _scale_kernel(x_ref, scale_ref, offset_ref, o_ref):
    # (x - mean) / std == x * (1/std) + (-mean/std); scale/offset are per-row
    # (i.e. per (n, c)) constants broadcast across the lane (H*W) dim.
    x = x_ref[...].astype(jnp.float32)
    o_ref[...] = (x * scale_ref[...] + offset_ref[...]).astype(o_ref.dtype)


# ---------------------------------------------------------------------------
# Block selection: always legal, VMEM-bounded
# ---------------------------------------------------------------------------
def _pick_blocks(rows, cols):
    # Row (sublane) block: 8-divisible or full extent, capped at 256 rows.
    if rows % 8 == 0:
        br = min(rows, 256)
    elif rows <= 256:
        br = rows                  # full extent is always legal
    else:
        br = 256                   # ragged edge rows handled by Pallas masking
    # Column (lane) block: 128-divisible or full extent, capped at 2048 lanes.
    if cols % 128 == 0:
        bc = min(cols, 2048)
    elif cols <= 2048:
        bc = cols                  # full extent is always legal
    else:
        bc = 2048                  # ragged edge cols handled by Pallas masking
    return br, bc


# ---------------------------------------------------------------------------
# Wrapper
# ---------------------------------------------------------------------------
def scaling_layer(x):
    """x: [N, 3, H, W] (NCHW, same as the torch module). Returns same shape/dtype."""
    N, C, H, W = x.shape
    assert C == len(_MEAN), "ScalingLayer expects 3-channel RGB input"
    R, HW = N * C, H * W
    x2 = x.reshape(R, HW)

    # Tiny per-row constants (plain-JAX glue): scale = 1/std, offset = -mean/std,
    # laid out to match the (n, c) row ordering of the reshape above.
    inv_std = 1.0 / jnp.asarray(_STD, jnp.float32)
    mean = jnp.asarray(_MEAN, jnp.float32)
    scale = jnp.tile(inv_std, N).reshape(R, 1)
    offset = jnp.tile(-mean * inv_std, N).reshape(R, 1)

    br, bc = _pick_blocks(R, HW)
    grid = (pl.cdiv(R, br), pl.cdiv(HW, bc))

    out = pl.pallas_call(
        _scale_kernel,
        out_shape=jax.ShapeDtypeStruct((R, HW), x.dtype),
        grid_spec=pltpu.PrefetchScalarGridSpec(
            num_scalar_prefetch=0,
            grid=grid,
            in_specs=[
                pl.BlockSpec((br, bc), lambda i, j: (i, j)),
                pl.BlockSpec((br, 1), lambda i, j: (i, 0)),
                pl.BlockSpec((br, 1), lambda i, j: (i, 0)),
            ],
            out_specs=pl.BlockSpec((br, bc), lambda i, j: (i, j)),
        ),
        compiler_params=pltpu.CompilerParams(
            dimension_semantics=("parallel", "parallel")),
    )(x2, scale, offset)
    return out.reshape(N, C, H, W)


if __name__ == "__main__":
    key = jax.random.PRNGKey(0)
    N, C, H, W = 2, 3, 16, 16
    x = jax.random.uniform(key, (N, C, H, W), jnp.float32, -1.0, 1.0)

    fn = jax.jit(scaling_layer)
    out = fn(x)
    jax.block_until_ready(out)

    # Reference check against the module's exact math: (x - mean) / std.
    mean = jnp.asarray(_MEAN, jnp.float32)[None, :, None, None]
    std = jnp.asarray(_STD, jnp.float32)[None, :, None, None]
    ref = (x - mean) / std
    assert out.shape == (N, C, H, W) and out.dtype == jnp.float32
    assert jnp.allclose(out, ref, rtol=1e-5, atol=1e-5)
    print("KERNEL_OK")
</pallas_src>

<mosaic_0001>
module attributes {stable_mosaic.version = 11 : i64} {
  func.func @_scale_kernel(%arg0: i32, %arg1: i32, %arg2: memref<6x256xf32, #tpu.memory_space<vmem>>, %arg3: memref<6x1xf32, #tpu.memory_space<vmem>>, %arg4: memref<6x1xf32, #tpu.memory_space<vmem>>, %arg5: memref<6x256xf32, #tpu.memory_space<vmem>>) attributes {dimension_semantics = [#tpu.dimension_semantics<parallel>, #tpu.dimension_semantics<parallel>], iteration_bounds = array<i64: 1, 1>, scalar_prefetch = 0 : i64, scratch_operands = 0 : i64, tpu.core_type = #tpu.core_type<tc>, window_params = [{transform_indices = @transform_0, window_bounds = array<i64: 6, 256>}, {transform_indices = @transform_1, window_bounds = array<i64: 6, 1>}, {transform_indices = @transform_2, window_bounds = array<i64: 6, 1>}, {transform_indices = @transform_3, window_bounds = array<i64: 6, 256>}]} {
    %c0 = arith.constant 0 : index
    %c0_0 = arith.constant 0 : index
    %0 = vector.load %arg2[%c0, %c0_0] : memref<6x256xf32, #tpu.memory_space<vmem>>, vector<6x256xf32>
    %c0_1 = arith.constant 0 : index
    %c0_2 = arith.constant 0 : index
    %1 = vector.load %arg3[%c0_1, %c0_2] : memref<6x1xf32, #tpu.memory_space<vmem>>, vector<6x1xf32>
    %2 = vector.broadcast %1 : vector<6x1xf32> to vector<6x256xf32>
    %3 = arith.mulf %0, %2 : vector<6x256xf32>
    %c0_3 = arith.constant 0 : index
    %c0_4 = arith.constant 0 : index
    %4 = vector.load %arg4[%c0_3, %c0_4] : memref<6x1xf32, #tpu.memory_space<vmem>>, vector<6x1xf32>
    %5 = vector.broadcast %4 : vector<6x1xf32> to vector<6x256xf32>
    %6 = arith.addf %3, %5 : vector<6x256xf32>
    %c0_5 = arith.constant 0 : index
    %c0_6 = arith.constant 0 : index
    %7 = vector.load %arg5[%c0_5, %c0_6] : memref<6x256xf32, #tpu.memory_space<vmem>>, vector<6x256xf32>
    tpu.vector_store %arg5[%c0_5, %c0_6], %6 {strides = array<i32>} : memref<6x256xf32, #tpu.memory_space<vmem>>, vector<6x256xf32>,
    return
  }
  func.func @transform_0(%arg0: i32, %arg1: i32) -> (i32, i32) {
    %c0_i32 = arith.constant 0 : i32
    return %arg0, %arg1 : i32, i32
  }
  func.func @transform_1(%arg0: i32, %arg1: i32) -> (i32, i32) {
    %c0_i32 = arith.constant 0 : i32
    %c0_i32_0 = arith.constant 0 : i32
    return %arg0, %c0_i32 : i32, i32
  }
  func.func @transform_2(%arg0: i32, %arg1: i32) -> (i32, i32) {
    %c0_i32 = arith.constant 0 : i32
    %c0_i32_0 = arith.constant 0 : i32
    return %arg0, %c0_i32 : i32, i32
  }
  func.func @transform_3(%arg0: i32, %arg1: i32) -> (i32, i32) {
    %c0_i32 = arith.constant 0 : i32
    return %arg0, %arg1 : i32, i32
  }
}

</mosaic_0001>

<bundles_post_ra>
// kernel: tile.14
= control target key start
LH: loop header
LB: loop body
LE: loop exit
PB: predicated region body
PF: predicated region fallthrough
CT: control target
= control target key end

     0   :  { %s22_s0 = inlined_call_operand.vmem [shape: f32[3], index: 0, kind: input, shape index: {}]   ;;  %s23_s1 = inlined_call_operand.vmem [shape: f32[2,3], index: 1, kind: output, shape index: {}]  }
   0x1   :  { %v4_v0 = vld [vmem:[%s22_s0] ss:$0 sm:$0xff] }
   0x2   :  { %5 = vst [vmem:[%s23_s1] sm:$0x3] %v4_v0 }

// kernel: tile.1
= control target key start
LH: loop header
LB: loop body
LE: loop exit
PB: predicated region body
PF: predicated region fallthrough
CT: control target
= control target key end

     0   :  { %vm7_vm0 = vcmask 7168   ;;  %s26_s10 = smov 126   ;;  %s49_s0 = inlined_call_operand.vmem [shape: f32[2,3], index: 0, kind: input, shape index: {}]   ;;  %s50_s1 = inlined_call_operand.vmem [shape: f32[6,1], index: 1, kind: output, shape index: {}]  }
   0x1   :  { %v4_v0 = vld [vmem:[%s49_s0] sm:$0x3]  ;;  %s25_s0 = smov 127  }
   0x2   :  { %5 = vst [vmem:[#allocation0] sm:$0x3] %v4_v0 }
   0x9   :  { %v9_v1 = vld [vmem:[#allocation0] sm:$0x3]  }
   0xa   :  { %v6_v2 = vld [vmem:[#allocation0] sm:$0x3]   ;;  %10 = vrot.lane.b32.xlu0 %v9_v1, %s25_s0 }
   0xb   :  { %8 = vst.msk [vmem:[%s50_s1] ss:$3 sm:$0x3] %vm7_vm0, %v6_v2   ;;  %v15_v3 = vld [vmem:[#allocation0] sm:$0x3]  }
   0xe   :  { %16 = vrot.lane.b32.xlu0 %v15_v3, %s26_s10 }
  0x7c   :  { %v11_v4 = vpop.permute.xlu0 %10  }
  0x7d   :  { %21 = vst.msk [vmem:[%s50_s1 + $0x1] ss:$3 sm:$0x3] %vm7_vm0, %v11_v4  }
  0x80   :  { %v17_v5 = vpop.permute.xlu0 %16  }
  0x81   :  { %22 = vst.msk [vmem:[%s50_s1 + $0x2] ss:$3 sm:$0x3] %vm7_vm0, %v17_v5  }

// kernel: scaling_layer.1
= control target key start
LH: loop header
LB: loop body
LE: loop exit
PB: predicated region body
PF: predicated region fallthrough
CT: control target
= control target key end

     0   :  { %v40_v0 = vmov 0   ;;  %s79_s1 = inlined_call_operand.vmem [shape: f32[6,1], index: 1, kind: input, shape index: {}]   ;;  %s80_s2 = inlined_call_operand.vmem [shape: f32[6,1], index: 2, kind: input, shape index: {}]   ;;  %s81_s0 = inlined_call_operand.vmem [shape: f32[6,256], index: 0, kind: input, shape index: {}]   ;;  %s82_s3 = inlined_call_operand.vmem [shape: f32[6,256], index: 3, kind: output, shape index: {}]  }
   0x1   :  { %39 = vset.pattern.permute.xlu0 %v40_v0  ;;  %v16_v1 = vld [vmem:[%s79_s1] sm:$0x3f]  ;;  %v15_v5 = vld [vmem:[%s81_s0 + $0x8] sm:$0x3f] }
   0x2   :  { %19 = vperm.xlu0 %39, %v16_v1   ;;  %v24_v2 = vld [vmem:[%s80_s2] sm:$0x3f] }
   0x3   :  { %v14_v4 = vld [vmem:[%s81_s0] sm:$0x3f] }
   0x6   :  { %27 = vperm.xlu0 %39, %v24_v2  }
  0x81   :  { %v20_v3 = vpop.permute.xlu0 %19 }
  0x82   :  { %v22_v6 = vmul.f32 %v20_v3, %v14_v4  ;;  %v23_v7 = vmul.f32 %v20_v3, %v15_v5 }
  0x85   :  { %v28_v8 = vpop.permute.xlu0 %27 }
  0x86   :  { %v30_v9 = vadd.f32 %v28_v8, %v22_v6  ;;  %v31_v10 = vadd.f32 %v28_v8, %v23_v7 }
  0x88   :  { %32 = vst [vmem:[%s82_s3] sm:$0x3f] %v30_v9  ;;  %33 = vst [vmem:[%s82_s3 + $0x8] sm:$0x3f] %v31_v10 }

</bundles_post_ra>
